<compile_context>
chip_gen: v7x
topology: tpu7x:2x2x1
jax: 0.10.0
libtpu: 0.0.40
codegen_flags: <defaults>
</compile_context>

<pallas_src>
import functools

import jax
import jax.numpy as jnp
from jax import lax
from jax.experimental import pallas as pl
from jax.experimental.pallas import tpu as pltpu

_LANE = 128


def adaptive_pool_feat_mult(pool_type="avg"):
    return 2 if pool_type == "catavgmax" else 1


def _cdiv(a, b):
    return -(-a // b)


def _round_down(x, m):
    return max(m, (x // m) * m)


def _round_up(x, m):
    return ((x + m - 1) // m) * m


def _tpu_caps():
    """Returns (physical VMEM bytes, is_v5-ish chip) with conservative fallbacks."""
    vmem_cap = 0
    is_v5 = False
    try:
        info = pltpu.get_tpu_info()
        vmem_cap = int(getattr(info, "vmem_capacity_bytes", 0))
    except Exception:
        pass
    try:
        kind = jax.devices()[0].device_kind.lower()
        is_v5 = "v5" in kind
    except Exception:
        pass
    return vmem_cap, is_v5


# --------------------------------------------------------------------------
# Kernels
# --------------------------------------------------------------------------
def _row_mean_kernel(x_ref, o_ref, *, inv_hw):
    # x_ref: (row_tile, hw) tile of the flattened input (input dtype).
    # o_ref: (1, 1, row_tile) lane-dense per-row means (input dtype).
    row_tile, hw = x_ref.shape
    x = x_ref[...]
    ones = jnp.ones((1, hw), dtype=x.dtype)
    # Row sums on the MXU: contract the HW axis of both operands (ones @ x^T),
    # landing the result lane-major as (1, row_tile) with f32 accumulation.
    # HIGHEST keeps f32 inputs f32-accurate; the kernel is HBM-bound so the
    # extra MXU passes are free and no XLU relayout is needed.
    sums = lax.dot_general(
        ones,
        x,
        dimension_numbers=(((1,), (1,)), ((), ())),
        preferred_element_type=jnp.float32,
        precision=lax.Precision.HIGHEST,
    )  # (1, row_tile), f32
    o_ref[...] = (sums * inv_hw).reshape(1, 1, row_tile).astype(o_ref.dtype)


def _folded_row_mean_kernel(x_ref, sel_ref, o_ref, *, inv_hw):
    # x_ref:   (rt_f, g*hw)  g=128 original rows folded into the lane axis.
    # sel_ref: (g*hw, g)     0/1 block-diagonal selector (resident, DMA'd once).
    # o_ref:   (rt_f, g)     o[r, j] = mean of original row r*g + j.
    sums = jnp.dot(
        x_ref[...],
        sel_ref[...],
        preferred_element_type=jnp.float32,
        precision=lax.Precision.HIGHEST,
    )  # (rt_f, g), f32
    o_ref[...] = (sums * inv_hw).astype(o_ref.dtype)


# --------------------------------------------------------------------------
# Wrappers
# --------------------------------------------------------------------------
def _simple_path(x, rows, hw, sublane, itemsize, per_buffer_budget, inv_hw,
                 cost, compiler_params):
    x2 = x.reshape(rows, hw)  # free (contiguous) reshape, no HBM copy

    # Tiny-input corner only: fewer rows than one sublane tile -> pad a few rows.
    if rows < sublane:
        x2 = jnp.pad(x2, ((0, sublane - rows), (0, 0)))
    padded_rows = max(rows, sublane)

    # True VMEM footprint of one block row: the last dim lane-pads to 128.
    row_vmem_bytes = _round_up(hw, _LANE) * itemsize
    rows_by_vmem = _round_down(per_buffer_budget // row_vmem_bytes, sublane)
    rows_floor = _round_down(padded_rows, sublane)

    row_tile = min(rows_by_vmem, rows_floor)
    row_tile = _round_down(row_tile, _LANE if row_tile >= _LANE else sublane)
    num_tiles = _cdiv(padded_rows, row_tile)

    # Keep >= 2 (balanced) grid steps when possible so both v7x TCs stay busy.
    if num_tiles < 2 and rows_floor >= 2 * sublane:
        num_tiles = 2
    grain = _LANE if row_tile >= _LANE else sublane
    row_tile = max(
        sublane,
        min(row_tile, _round_up(_cdiv(padded_rows, num_tiles), grain), rows_floor),
    )
    num_tiles = _cdiv(padded_rows, row_tile)
    # TODO(synk): for extremely large H*W (one sublane-tile block exceeding the
    # VMEM budget) add a second "arbitrary" grid axis over HW with an f32
    # scratch accumulator; not needed for realistic CNN shapes.

    out = pl.pallas_call(
        functools.partial(_row_mean_kernel, inv_hw=inv_hw),
        out_shape=jax.ShapeDtypeStruct((num_tiles, 1, row_tile), x.dtype),
        grid_spec=pltpu.PrefetchScalarGridSpec(
            num_scalar_prefetch=0,
            grid=(num_tiles,),
            in_specs=[pl.BlockSpec((row_tile, hw), lambda i: (i, 0))],
            out_specs=pl.BlockSpec((1, 1, row_tile), lambda i: (i, 0, 0)),
        ),
        compiler_params=compiler_params,
        cost_estimate=cost,
    )(x2)
    # Ragged last tile reads undefined rows; their (independent) results land
    # in output slots that are sliced off here — no extra HBM padding pass.
    return out.reshape(num_tiles * row_tile)[:rows]


def _folded_path(x, rows, hw, g, sublane, itemsize, per_buffer_budget, inv_hw,
                 cost, compiler_params):
    rows_f = rows // g
    gk = g * hw  # lane extent; multiple of 128 since g == 128
    x2 = x.reshape(rows_f, gk)  # free (contiguous) reshape, no HBM copy

    # 0/1 block-diagonal selector: sel[j*hw + k, j] = 1 for k in [0, hw).
    sel = (
        (jnp.arange(gk, dtype=jnp.int32)[:, None] // hw)
        == jnp.arange(g, dtype=jnp.int32)[None, :]
    ).astype(x.dtype)
    sel_bytes = gk * g * itemsize

    row_vmem_bytes = gk * itemsize  # no lane padding: gk is a multiple of 128
    x_budget = max(row_vmem_bytes * sublane, per_buffer_budget - sel_bytes)
    rows_f_by_vmem = _round_down(x_budget // row_vmem_bytes, sublane)

    if rows_f < sublane:
        rt_f = rows_f  # single full-extent block
        num_tiles = 1
    else:
        rows_f_floor = _round_down(rows_f, sublane)
        rt_f = min(rows_f_by_vmem, rows_f_floor)
        num_tiles = _cdiv(rows_f, rt_f)
        if num_tiles < 2 and rows_f_floor >= 2 * sublane:
            num_tiles = 2
        rt_f = max(
            sublane,
            min(rt_f, _round_up(_cdiv(rows_f, num_tiles), sublane), rows_f_floor),
        )
        num_tiles = _cdiv(rows_f, rt_f)

    out = pl.pallas_call(
        functools.partial(_folded_row_mean_kernel, inv_hw=inv_hw),
        out_shape=jax.ShapeDtypeStruct((num_tiles * rt_f, g), x.dtype),
        grid_spec=pltpu.PrefetchScalarGridSpec(
            num_scalar_prefetch=0,
            grid=(num_tiles,),
            in_specs=[
                pl.BlockSpec((rt_f, gk), lambda i: (i, 0)),
                pl.BlockSpec((gk, g), lambda i: (0, 0)),  # resident, DMA'd once
            ],
            out_specs=pl.BlockSpec((rt_f, g), lambda i: (i, 0)),
        ),
        compiler_params=compiler_params,
        cost_estimate=cost,
    )(x2, sel)
    # Row-major flatten restores the original row order (r*g + j).
    return out.reshape(num_tiles * rt_f * g)[:rows]


def select_adaptive_pool2d(x, pool_type="avg", output_size=1, fold=None):
    """Equivalent of SelectAdaptivePool2d(output_size=1, pool_type='avg').forward.

    x: (N, C, H, W)  ->  (N, C, 1, 1)
    """
    assert pool_type == "avg", "only 'avg' implemented"
    assert output_size == 1, "only global pooling (output_size=1) implemented"
    # TODO(synk): 'max', 'avgmax', 'catavgmax' pool types not implemented here.

    N, C, H, W = x.shape
    rows = N * C
    hw = H * W
    itemsize = jnp.dtype(x.dtype).itemsize
    # Minimum second-minor tile: 8 for 4-byte dtypes, 16 for bf16, 32 for int8/fp8.
    sublane = max(8, 32 // itemsize)
    inv_hw = 1.0 / hw

    vmem_cap, is_v5 = _tpu_caps()
    if vmem_cap >= 100 * (1 << 20):       # v5e / v6e: 128 MiB physical VMEM
        per_buffer_budget = 16 * (1 << 20)
        vmem_limit = 64 * (1 << 20)
    else:                                 # v7x (64 MiB) or unknown: conservative
        per_buffer_budget = 10 * (1 << 20)
        vmem_limit = 48 * (1 << 20)

    cost = pl.CostEstimate(
        flops=2 * rows * hw,
        transcendentals=0,
        bytes_accessed=rows * hw * itemsize + rows * itemsize,
    )
    compiler_params = pltpu.CompilerParams(
        dimension_semantics=("parallel",),
        vmem_limit_bytes=vmem_limit,
    )
    # TODO(synk): switch the row axis to pltpu.CORE_PARALLEL if plain "parallel"
    # turns out not to shard the grid across v7x's two TensorCores.

    g = _LANE
    if fold is None:
        # Fold rows into the lane axis only when per-row HBM segments are tiny
        # (DMA-descriptor bound); skip on v5e where slower HBM makes the small
        # segments non-binding and MXU headroom is smaller.
        fold = (hw * itemsize < 512) and (rows % g == 0) and (rows >= g) and (not is_v5)

    if fold and rows % g == 0 and rows >= g:
        out_flat = _folded_path(x, rows, hw, g, sublane, itemsize,
                                per_buffer_budget, inv_hw, cost, compiler_params)
    else:
        out_flat = _simple_path(x, rows, hw, sublane, itemsize,
                                per_buffer_budget, inv_hw, cost, compiler_params)
    return out_flat.reshape(N, C, 1, 1)


if __name__ == "__main__":
    key0, key1, key2 = jax.random.split(jax.random.PRNGKey(0), 3)

    # Primary (spec-sized) check: simple path, single tile.
    N, C, H, W = 2, 4, 16, 16
    x = jax.random.normal(key0, (N, C, H, W), dtype=jnp.float32)
    y = jax.block_until_ready(select_adaptive_pool2d(x, pool_type="avg", output_size=1))
    y_ref = jnp.mean(x, axis=(2, 3), keepdims=True)
    assert y.shape == (N, C, 1, 1)
    assert jnp.allclose(y, y_ref, atol=1e-5, rtol=1e-4)

    # Multi-tile / ragged-last-tile check on the simple path (rows = 1200, hw = 49).
    xb = jax.random.normal(key1, (2, 600, 7, 7), dtype=jnp.float32)
    yb = jax.block_until_ready(select_adaptive_pool2d(xb))
    yb_ref = jnp.mean(xb, axis=(2, 3), keepdims=True)
    assert yb.shape == (2, 600, 1, 1)
    assert jnp.allclose(yb, yb_ref, atol=1e-5, rtol=1e-4)

    # Folded-layout check (rows = 1280 = 10 * 128, hw = 49); forced so the fold
    # code path is exercised regardless of the TPU generation we run on.
    xc = jax.random.normal(key2, (2, 640, 7, 7), dtype=jnp.float32)
    yc = jax.block_until_ready(select_adaptive_pool2d(xc, fold=True))
    yc_ref = jnp.mean(xc, axis=(2, 3), keepdims=True)
    assert yc.shape == (2, 640, 1, 1)
    assert jnp.allclose(yc, yc_ref, atol=1e-5, rtol=1e-4)

    # Same shape through the auto / simple-friendly path for cross-check.
    yd = jax.block_until_ready(select_adaptive_pool2d(xc, fold=False))
    assert jnp.allclose(yd, yc_ref, atol=1e-5, rtol=1e-4)

    print("KERNEL_OK")
</pallas_src>

<mosaic_0001>
module attributes {stable_mosaic.version = 11 : i64} {
  func.func @_row_mean_kernel(%arg0: i32, %arg1: memref<8x256xf32, #tpu.memory_space<vmem>>, %arg2: memref<1x1x8xf32, #tpu.memory_space<vmem>>) attributes {dimension_semantics = [#tpu.dimension_semantics<parallel>], iteration_bounds = array<i64: 1>, scalar_prefetch = 0 : i64, scratch_operands = 0 : i64, tpu.core_type = #tpu.core_type<tc>, window_params = [{transform_indices = @transform_0, window_bounds = array<i64: 8, 256>}, {transform_indices = @transform_1, window_bounds = array<i64: 1, 1, 8>}]} {
    %c0 = arith.constant 0 : index
    %c0_0 = arith.constant 0 : index
    %0 = vector.load %arg1[%c0, %c0_0] : memref<8x256xf32, #tpu.memory_space<vmem>>, vector<8x256xf32>
    %cst = arith.constant 1.000000e+00 : f32
    %1 = vector.broadcast %cst : f32 to vector<1x256xf32>
    %cst_1 = arith.constant dense<0.000000e+00> : vector<1x8xf32>
    %2 = tpu.matmul %1, %0, %cst_1 {dimension_numbers = #tpu.dot_dimension_numbers<[1], [1], [0], [0], [0, 0, 1, 0], [], []>, precision = #tpu.contract_precision<fp32>} : vector<1x256xf32>, vector<8x256xf32>, vector<1x8xf32> -> vector<1x8xf32>
    %cst_2 = arith.constant 3.906250e-03 : f32
    %3 = vector.broadcast %cst_2 : f32 to vector<1x8xf32>
    %4 = arith.mulf %2, %3 : vector<1x8xf32>
    %5 = vector.shape_cast %4 : vector<1x8xf32> to vector<1x1x8xf32>
    %c0_3 = arith.constant 0 : index
    %c0_4 = arith.constant 0 : index
    %c0_5 = arith.constant 0 : index
    %6 = vector.load %arg2[%c0_3, %c0_4, %c0_5] : memref<1x1x8xf32, #tpu.memory_space<vmem>>, vector<1x1x8xf32>
    tpu.vector_store %arg2[%c0_3, %c0_4, %c0_5], %5 {strides = array<i32>} : memref<1x1x8xf32, #tpu.memory_space<vmem>>, vector<1x1x8xf32>,
    return
  }
  func.func @transform_0(%arg0: i32) -> (i32, i32) {
    %c0_i32 = arith.constant 0 : i32
    %c0_i32_0 = arith.constant 0 : i32
    return %arg0, %c0_i32 : i32, i32
  }
  func.func @transform_1(%arg0: i32) -> (i32, i32, i32) {
    %c0_i32 = arith.constant 0 : i32
    %c0_i32_0 = arith.constant 0 : i32
    %c0_i32_1 = arith.constant 0 : i32
    return %arg0, %c0_i32, %c0_i32_0 : i32, i32, i32
  }
}

</mosaic_0001>

<bundles_post_ra>
// kernel: tpu_custom_call.1
= control target key start
LH: loop header
LB: loop body
LE: loop exit
PB: predicated region body
PF: predicated region fallthrough
CT: control target
= control target key end

     0   :  { %6 = vsyncpa [#allocation3], 0  ;;  %s586_s0 = inlined_call_operand.hbm [shape: f32[8,256], index: 0, kind: input, shape index: {}]   ;;  %s587_s1 = inlined_call_operand.hbm [shape: f32[1,1,8], index: 1, kind: output, shape index: {}]  }
   0x1   :  { %7 = vsyncpa [#allocation4], 0  ;;  %s548_s6 = smov [#allocation2]   ;;  %s500_s10 = scalar_lea.hbm %s586_s0, 256 }
   0x2   :  { %s14_s7 = sshll.u32 %s548_s6, 4  ;;  %p501_p0 = scmp.ne.s32.totalorder %s586_s0, %s500_s10  ;;  %s15_s7 = int_to_ptr.vmem [resolvable:$true] %s14_s7 }
   0x3   :  { %p504_p1 = scmp.lt.u32.totalorder %s500_s10, %s586_s0 }
   0x5   :  { %p506_p2 = pnand %p504_p1, %p501_p0 }
   0x7   :  { %509 = shalt.err (!%p506_p2)
}
   0x8   :  { %s510_s15 = scalar_lea.vmem %s15_s7, 256  ;;  %p515_p4 = scmp.lt.s32.totalorder %s15_s7, %s15_s7 }
   0x9   :  { %p511_p3 = scmp.ne.s32.totalorder %s15_s7, %s510_s15  ;;  %p516_p5 = scmp.lt.s32.totalorder %s510_s15, %s510_s15 }
   0xb   :  { %p517_p6 = por %p516_p5, %p515_p4 }
   0xd   :  { %p518_p7 = pnand %p517_p6, %p511_p3 }
   0xf   :  { %521 = shalt.err (!%p518_p7)
}
  0x10   :  { %17 = dma.hbm_to_vmem [thread:$0]  %s586_s0, 256, %s15_s7, [#allocation3]  }
  0x11   :  { %544 = dma.done.wait [#allocation3], 256  }
  0x12   :  { %545 = vsyncadd [#allocation3], 4294967040  ;;  %v549_v0 = vmov 0.0   ;;  %v22_v1 = vld [vmem:[#allocation2 + $0x8] sm:$0xff]  ;;  %v21_v2 = vld [vmem:[#allocation2] sm:$0xff]  ;;  %v550_v11 = vmov 1.0  }
  0x13   :  { %89 = vmatprep.mubr.f32.mxu1 %v549_v0  ;;  %315 = vmatprep.mubr.f32.mxu0 %v549_v0  ;;  %v23_v3 = vand.u32 4294901760, %v22_v1  ;;  %v25_v4 = vand.u32 4294901760, %v21_v2  ;;  %s551_s0 = smov [#allocation5]   ;;  %vm470_vm0 = vcmask 57344  }
  0x14   :  { %s478_s18 = sshll.u32 %s551_s0, 4  ;;  %s479_s18 = int_to_ptr.vmem [resolvable:$true] %s478_s18 }
  0x15   :  { %24 = vmatprep.subr.mxu1 %v23_v3  ;;  %250 = vmatprep.subr.mxu0 %v23_v3  ;;  %v102_v5 = vsub.f32 %v21_v2, %v25_v4  ;;  %v96_v6 = vsub.f32 %v22_v1, %v23_v3  ;;  %s522_s19 = scalar_lea.vmem %s479_s18, 16  ;;  %s526_s20 = scalar_lea.vmem %s479_s18, 32 }
  0x16   :  { %26 = vmatpush1.xpose.msra.mxu1 %v25_v4  ;;  %252 = vmatpush1.xpose.msra.mxu0 %v25_v4  ;;  %p523_p8 = scmp.ne.s32.totalorder %s479_s18, %s522_s19  ;;  %p527_p9 = scmp.lt.s32.totalorder %s479_s18, %s479_s18 }
  0x17   :  { %v97_v7 = vand.u32 4294901760, %v96_v6  ;;  %v103_v8 = vand.u32 4294901760, %v102_v5  ;;  %p528_p10 = scmp.lt.s32.totalorder %s526_s20, %s522_s19 }
  0x19   :  { %90 = vmatmul.mubr.f32.vlgmr.msra.gmra.mrb[0].mxu1 %v549_v0  ;;  %316 = vmatmul.mubr.f32.vlgmr.msra.gmra.mrb[0].mxu0 %v549_v0  ;;  %v98_v9 = vsub.f32 %v96_v6, %v97_v7  ;;  %v104_v10 = vsub.f32 %v102_v5, %v103_v8  ;;  %p529_p11 = por %p528_p10, %p527_p9 }
  0x1a   :  { %324 = vmatprep.subr.mxu0 %v97_v7  ;;  %169 = vmatprep.mubr.f32.mxu1 %v550_v11 }
  0x1b   :  { %v99_v12 = vand.u32 4294901760, %v98_v9  ;;  %v105_v13 = vand.u32 4294901760, %v104_v10  ;;  %328 = vmatpush1.xpose.msra.mxu0 %v103_v8  ;;  %391 = vmatprep.mubr.f32.mxu0 %v550_v11  ;;  %p530_p12 = pnand %p529_p11, %p523_p8 }
  0x1c   :  { %398 = vmatprep.subr.mxu0 %v23_v3 }
  0x1d   :  { %100 = vmatprep.subr.mxu1 %v99_v12 }
  0x1e   :  { %106 = vmatpush1.xpose.msra.mxu1 %v105_v13 }
  0x1f   :  { %177 = vmatprep.subr.mxu1 %v96_v6 }
  0x21   :  { %170 = vmatmul.mubr.f32.vlgmr.msra.gmra.mrb[0].mxu1 %v550_v11  ;;  %392 = vmatmul.mubr.f32.vlgmr.msra.gmra.mrb[0].mxu0 %v550_v11 }
  0x22   :  { %180 = vmatpush1.xpose.msra.mxu1 %v102_v5  ;;  %400 = vmatpush1.xpose.msra.mxu0 %v25_v4 }
  0x23   :  { %243 = vmatprep.mubr.f32.mxu1 %v549_v0  ;;  %463 = vmatprep.mubr.f32.mxu0 %v550_v11 }
  0x29   :  { %244 = vmatmul.mubr.f32.vlgmr.msra.gmra.mrb[0].mxu1 %v549_v0  ;;  %464 = vmatmul.mubr.f32.vlgmr.msra.gmra.mrb[0].mxu0 %v550_v11 }
  0xfc   :  { %v245_v14 = vpop.f32.mrb[0].mxu1  ;;  %v465_v15 = vpop.f32.mrb[0].mxu0 }
  0xfd   :  { %v487_v16 = vadd.f32 %v465_v15, %v245_v14  ;;  %v247_v17 = vpop.f32.mrb[1].mxu1  ;;  %v467_v18 = vpop.f32.mrb[1].mxu0 }
  0xff   :  { %v469_v19 = vmul.f32 0.00390625, %v487_v16 }
 0x101   :  { %471 = vst.msk [vmem:[#allocation5] sm:$0x1] %vm470_vm0, %v469_v19 }
 0x102   :  { %533 = shalt.err (!%p530_p12)
}
 0x103   :  { %s534_s23 = scalar_lea.hbm %s587_s1, 16 }
 0x104   :  { %p535_p13 = scmp.ne.s32.totalorder %s587_s1, %s534_s23  ;;  %p538_p0 = scmp.lt.u32.totalorder %s534_s23, %s587_s1 }
 0x106   :  { %p540_p1 = pnand %p538_p0, %p535_p13 }
 0x108   :  { %543 = shalt.err (!%p540_p1)
}
 0x109   :  { %481 = dma.vmem_to_hbm [thread:$0]  %s479_s18, 16, %s587_s1, [#allocation4]  }
 0x10a   :  { %546 = dma.done.wait [#allocation4], 16  }
 0x10b   :  { %547 = vsyncadd [#allocation4], 4294967280 }
 0x10c   :  { %485 = vsyncpa [#allocation3], 1 }
 0x10d   :  { %486 = vsyncpa [#allocation4], 1 }

</bundles_post_ra>
